<compile_context>
chip_gen: v5e
topology: v5e:2x2
jax: 0.10.0
libtpu: 0.0.40
codegen_flags: <defaults>
</compile_context>

<pallas_src>
import jax
import jax.numpy as jnp
from jax.experimental import pallas as pl
from jax.experimental.pallas import tpu as pltpu


def _bm_value_kernel(x_ref, w1_ref, b1_ref, w2_ref, b2_ref, w3_ref, b3_ref, o_ref):
    x = x_ref[...]                                                    # (TM, D) bf16
    # fc1 + ReLU (dropout is identity in eval mode)
    h = jnp.dot(x, w1_ref[...], preferred_element_type=jnp.float32) + b1_ref[...]
    h = jnp.maximum(h, 0.0)
    # TODO(synk): training-mode dropout (cfg.dout_p) would use
    # pltpu.prng_random_bits + mask here; eval mode is identity.
    # fc2 (cast activation back to bf16 for the MXU, accumulate f32)
    h = jnp.dot(h.astype(w2_ref.dtype), w2_ref[...],
                preferred_element_type=jnp.float32) + b2_ref[...]
    # outer ReLU activation
    h = jnp.maximum(h, 0.0)
    # projection d -> 1 as VPU multiply + lane reduce (avoids a 1-column MXU matmul)
    o = jnp.sum(h * w3_ref[...], axis=-1, keepdims=True) + b3_ref[...]
    o_ref[...] = o.astype(o_ref.dtype)


def _round_up(x, m):
    return ((x + m - 1) // m) * m


def _choose_row_tile(n_rows, d, tm_req, vmem_budget=40 * 1024 * 1024):
    """Largest row tile (multiple of 16) fitting a ~40 MiB VMEM budget.

    40 MiB leaves headroom under v7x's 64 MiB physical VMEM (v5e/v6e have
    128 MiB).  Budget assumes worst case: bf16 W1/W2 double-buffered, bf16 x
    double-buffered, f32 intermediates of width 2D + D + D per row.
    """
    weight_bytes = 2 * (4 * d * d) * 2          # W1 + W2, bf16, x2 buffers
    const_bytes = 2 * 4 * (4 * d + 2)           # biases + w3 row (f32), x2 buffers
    per_row = 2 * 2 * d + 4 * (4 * d) + 16      # x (bf16, x2) + f32 temps + out
    avail = vmem_budget - weight_bytes - const_bytes
    cap = max(16, (avail // per_row) // 16 * 16) if avail > 16 * per_row else 16
    return max(16, min(_round_up(tm_req, 16), cap, _round_up(n_rows, 16)))


def _build_call(n_pad, d, tm, single_buffer_consts):
    grid = (n_pad // tm,)

    def const_spec(shape):
        # Grid-invariant blocks: single-buffer them to halve resident weight
        # VMEM (important on v7x at large D).
        if single_buffer_consts:
            return pl.BlockSpec(shape, lambda i: (0, 0), pipeline_mode=pl.Buffered(1))
        return pl.BlockSpec(shape, lambda i: (0, 0))

    return pl.pallas_call(
        _bm_value_kernel,
        out_shape=jax.ShapeDtypeStruct((n_pad, 1), jnp.float32),
        grid_spec=pltpu.PrefetchScalarGridSpec(
            num_scalar_prefetch=0,
            grid=grid,
            in_specs=[
                pl.BlockSpec((tm, d), lambda i: (i, 0)),   # x rows (bf16)
                const_spec((d, 2 * d)),                    # W1 (in, out) bf16
                const_spec((1, 2 * d)),                    # b1 f32
                const_spec((2 * d, d)),                    # W2 (in, out) bf16
                const_spec((1, d)),                        # b2 f32
                const_spec((1, d)),                        # W3 row (PyTorch layout) f32
                const_spec((1, 1)),                        # b3 f32
            ],
            out_specs=pl.BlockSpec((tm, 1), lambda i: (i, 0)),
        ),
        compiler_params=pltpu.CompilerParams(
            dimension_semantics=("parallel",),             # shards rows across v7x's 2 TCs
            vmem_limit_bytes=48 * 1024 * 1024,
        ),
    )


def bm_worker_value_function(x, params, *, tm=512):
    """x: (w_feat, aux) with w_feat (B, S, D) float32  ->  (B, S, 1) float32."""
    w_feat, _ = x   # matches `w_feat, _ = x` in the PyTorch forward
    B, S, D = w_feat.shape
    w1, b1, w2, b2, w3, b3 = params
    N = B * S

    tm = _choose_row_tile(N, D, tm)
    n_pad = pl.cdiv(N, tm) * tm

    x2 = w_feat.reshape(N, D)
    if n_pad != N:
        x2 = jnp.pad(x2, ((0, n_pad - N), (0, 0)))

    # bf16 inputs/weights: halve HBM traffic, use native bf16 MXU on v6e/v7x.
    # Accumulation stays f32 via preferred_element_type; bias/ReLU run in f32.
    x2 = x2.astype(jnp.bfloat16)
    args = (x2, w1.astype(jnp.bfloat16), b1, w2.astype(jnp.bfloat16), b2, w3, b3)

    try:
        out = _build_call(n_pad, D, tm, single_buffer_consts=True)(*args)
    except Exception:
        # pl.Buffered(1) is a VMEM-capacity optimization only; fall back to the
        # default double-buffered specs if this jax/Mosaic build rejects it.
        out = _build_call(n_pad, D, tm, single_buffer_consts=False)(*args)

    return out[:N].reshape(B, S, 1)


def init_params(key, d_model):
    """Deterministic synthetic parameters (shapes match the PyTorch module)."""
    d_ff = 2 * d_model
    k1, k2, k3 = jax.random.split(key, 3)
    scale = 0.1
    w1 = jax.random.normal(k1, (d_model, d_ff), jnp.float32) * scale   # fc1.weight^T
    b1 = jnp.full((1, d_ff), 0.01, jnp.float32)
    w2 = jax.random.normal(k2, (d_ff, d_model), jnp.float32) * scale   # fc2.weight^T
    b2 = jnp.full((1, d_model), 0.01, jnp.float32)
    w3 = jax.random.normal(k3, (1, d_model), jnp.float32) * scale      # projection.weight (1, d)
    b3 = jnp.full((1, 1), 0.01, jnp.float32)
    return (w1, b1, w2, b2, w3, b3)


def _reference_bf16(x, params):
    """Reference that mirrors the kernel's bf16-input / f32-accumulate path."""
    w1, b1, w2, b2, w3, b3 = params
    h = jnp.dot(x.astype(jnp.bfloat16), w1.astype(jnp.bfloat16),
                preferred_element_type=jnp.float32) + b1
    h = jnp.maximum(h, 0.0)
    h = jnp.dot(h.astype(jnp.bfloat16), w2.astype(jnp.bfloat16),
                preferred_element_type=jnp.float32) + b2
    h = jnp.maximum(h, 0.0)
    return jnp.dot(h, w3.T) + b3


def _reference_f32(x, params):
    w1, b1, w2, b2, w3, b3 = params
    h = jnp.maximum(x @ w1 + b1, 0.0)
    h = jnp.maximum(h @ w2 + b2, 0.0)
    return h @ w3.T + b3


if __name__ == "__main__":
    B, S, D = 2, 8, 32            # batch, seq, d_model_caps
    D_GOAL = 16                   # rl_goal_d (second tuple element, unused in forward)
    key = jax.random.PRNGKey(0)
    kx, kg, kp = jax.random.split(key, 3)
    w_feat = jax.random.normal(kx, (B, S, D), jnp.float32)
    goal = jax.random.normal(kg, (B, S, D_GOAL), jnp.float32)   # ignored (the `_` in forward)
    params = init_params(kp, D)

    y = bm_worker_value_function((w_feat, goal), params)
    y = jax.block_until_ready(y)

    assert y.shape == (B, S, 1)
    y_ref_bf16 = _reference_bf16(w_feat, params)
    y_ref_f32 = _reference_f32(w_feat, params)
    assert jnp.allclose(y, y_ref_bf16, atol=2e-3, rtol=2e-3), "mismatch vs bf16 reference"
    assert jnp.allclose(y, y_ref_f32, atol=5e-2, rtol=5e-2), "mismatch vs f32 reference"
    print("KERNEL_OK")
</pallas_src>

<mosaic_0001>
module attributes {stable_mosaic.version = 11 : i64} {
  func.func @_bm_value_kernel(%arg0: i32, %arg1: memref<16x32xbf16, #tpu.memory_space<vmem>>, %arg2: memref<32x64xbf16, #tpu.memory_space<vmem>>, %arg3: memref<1x64xf32, #tpu.memory_space<vmem>>, %arg4: memref<64x32xbf16, #tpu.memory_space<vmem>>, %arg5: memref<1x32xf32, #tpu.memory_space<vmem>>, %arg6: memref<1x32xf32, #tpu.memory_space<vmem>>, %arg7: memref<1x1xf32, #tpu.memory_space<vmem>>, %arg8: memref<16x1xf32, #tpu.memory_space<vmem>>) attributes {dimension_semantics = [#tpu.dimension_semantics<parallel>], iteration_bounds = array<i64: 1>, scalar_prefetch = 0 : i64, scratch_operands = 0 : i64, tpu.core_type = #tpu.core_type<tc>, window_params = [{transform_indices = @transform_0, window_bounds = array<i64: 16, 32>}, {pipeline_mode = #tpu.pipeline_mode<synchronous>, transform_indices = @transform_1, window_bounds = array<i64: 32, 64>}, {pipeline_mode = #tpu.pipeline_mode<synchronous>, transform_indices = @transform_2, window_bounds = array<i64: 1, 64>}, {pipeline_mode = #tpu.pipeline_mode<synchronous>, transform_indices = @transform_3, window_bounds = array<i64: 64, 32>}, {pipeline_mode = #tpu.pipeline_mode<synchronous>, transform_indices = @transform_4, window_bounds = array<i64: 1, 32>}, {pipeline_mode = #tpu.pipeline_mode<synchronous>, transform_indices = @transform_5, window_bounds = array<i64: 1, 32>}, {pipeline_mode = #tpu.pipeline_mode<synchronous>, transform_indices = @transform_6, window_bounds = array<i64: 1, 1>}, {transform_indices = @transform_7, window_bounds = array<i64: 16, 1>}]} {
    %c0 = arith.constant 0 : index
    %c0_0 = arith.constant 0 : index
    %0 = vector.load %arg1[%c0, %c0_0] : memref<16x32xbf16, #tpu.memory_space<vmem>>, vector<16x32xbf16>
    %c0_1 = arith.constant 0 : index
    %c0_2 = arith.constant 0 : index
    %1 = vector.load %arg2[%c0_1, %c0_2] : memref<32x64xbf16, #tpu.memory_space<vmem>>, vector<32x64xbf16>
    %cst = arith.constant dense<0.000000e+00> : vector<16x64xf32>
    %2 = tpu.matmul %0, %1, %cst {dimension_numbers = #tpu.dot_dimension_numbers<[1], [0], [0], [1], [0, 0, 1, 1], [], []>} : vector<16x32xbf16>, vector<32x64xbf16>, vector<16x64xf32> -> vector<16x64xf32>
    %c0_3 = arith.constant 0 : index
    %c0_4 = arith.constant 0 : index
    %3 = vector.load %arg3[%c0_3, %c0_4] : memref<1x64xf32, #tpu.memory_space<vmem>>, vector<1x64xf32>
    %4 = vector.broadcast %3 : vector<1x64xf32> to vector<16x64xf32>
    %5 = arith.addf %2, %4 : vector<16x64xf32>
    %cst_5 = arith.constant 0.000000e+00 : f32
    %6 = vector.broadcast %cst_5 : f32 to vector<16x64xf32>
    %7 = arith.maximumf %5, %6 : vector<16x64xf32>
    %8 = arith.truncf %7 : vector<16x64xf32> to vector<16x64xbf16>
    %c0_6 = arith.constant 0 : index
    %c0_7 = arith.constant 0 : index
    %9 = vector.load %arg4[%c0_6, %c0_7] : memref<64x32xbf16, #tpu.memory_space<vmem>>, vector<64x32xbf16>
    %cst_8 = arith.constant dense<0.000000e+00> : vector<16x32xf32>
    %10 = tpu.matmul %8, %9, %cst_8 {dimension_numbers = #tpu.dot_dimension_numbers<[1], [0], [0], [1], [0, 0, 1, 1], [], []>} : vector<16x64xbf16>, vector<64x32xbf16>, vector<16x32xf32> -> vector<16x32xf32>
    %c0_9 = arith.constant 0 : index
    %c0_10 = arith.constant 0 : index
    %11 = vector.load %arg5[%c0_9, %c0_10] : memref<1x32xf32, #tpu.memory_space<vmem>>, vector<1x32xf32>
    %12 = vector.broadcast %11 : vector<1x32xf32> to vector<16x32xf32>
    %13 = arith.addf %10, %12 : vector<16x32xf32>
    %cst_11 = arith.constant 0.000000e+00 : f32
    %14 = vector.broadcast %cst_11 : f32 to vector<16x32xf32>
    %15 = arith.maximumf %13, %14 : vector<16x32xf32>
    %c0_12 = arith.constant 0 : index
    %c0_13 = arith.constant 0 : index
    %16 = vector.load %arg6[%c0_12, %c0_13] : memref<1x32xf32, #tpu.memory_space<vmem>>, vector<1x32xf32>
    %17 = vector.broadcast %16 : vector<1x32xf32> to vector<16x32xf32>
    %18 = arith.mulf %15, %17 : vector<16x32xf32>
    %cst_14 = arith.constant dense<0.000000e+00> : vector<16xf32>
    %19 = vector.multi_reduction <add>, %18, %cst_14 [1] : vector<16x32xf32> to vector<16xf32>
    %20 = vector.shape_cast %19 : vector<16xf32> to vector<16x1xf32>
    %c0_15 = arith.constant 0 : index
    %c0_16 = arith.constant 0 : index
    %21 = vector.load %arg7[%c0_15, %c0_16] : memref<1x1xf32, #tpu.memory_space<vmem>>, vector<1x1xf32>
    %22 = vector.broadcast %21 : vector<1x1xf32> to vector<16x1xf32>
    %23 = arith.addf %20, %22 : vector<16x1xf32>
    %c0_17 = arith.constant 0 : index
    %c0_18 = arith.constant 0 : index
    %24 = vector.load %arg8[%c0_17, %c0_18] : memref<16x1xf32, #tpu.memory_space<vmem>>, vector<16x1xf32>
    tpu.vector_store %arg8[%c0_17, %c0_18], %23 {strides = array<i32>} : memref<16x1xf32, #tpu.memory_space<vmem>>, vector<16x1xf32>,
    return
  }
  func.func @transform_0(%arg0: i32) -> (i32, i32) {
    %c0_i32 = arith.constant 0 : i32
    %c0_i32_0 = arith.constant 0 : i32
    return %arg0, %c0_i32 : i32, i32
  }
  func.func @transform_1(%arg0: i32) -> (i32, i32) {
    %c0_i32 = arith.constant 0 : i32
    %c0_i32_0 = arith.constant 0 : i32
    %c0_i32_1 = arith.constant 0 : i32
    return %c0_i32, %c0_i32_0 : i32, i32
  }
  func.func @transform_2(%arg0: i32) -> (i32, i32) {
    %c0_i32 = arith.constant 0 : i32
    %c0_i32_0 = arith.constant 0 : i32
    %c0_i32_1 = arith.constant 0 : i32
    return %c0_i32, %c0_i32_0 : i32, i32
  }
  func.func @transform_3(%arg0: i32) -> (i32, i32) {
    %c0_i32 = arith.constant 0 : i32
    %c0_i32_0 = arith.constant 0 : i32
    %c0_i32_1 = arith.constant 0 : i32
    return %c0_i32, %c0_i32_0 : i32, i32
  }
  func.func @transform_4(%arg0: i32) -> (i32, i32) {
    %c0_i32 = arith.constant 0 : i32
    %c0_i32_0 = arith.constant 0 : i32
    %c0_i32_1 = arith.constant 0 : i32
    return %c0_i32, %c0_i32_0 : i32, i32
  }
  func.func @transform_5(%arg0: i32) -> (i32, i32) {
    %c0_i32 = arith.constant 0 : i32
    %c0_i32_0 = arith.constant 0 : i32
    %c0_i32_1 = arith.constant 0 : i32
    return %c0_i32, %c0_i32_0 : i32, i32
  }
  func.func @transform_6(%arg0: i32) -> (i32, i32) {
    %c0_i32 = arith.constant 0 : i32
    %c0_i32_0 = arith.constant 0 : i32
    %c0_i32_1 = arith.constant 0 : i32
    return %c0_i32, %c0_i32_0 : i32, i32
  }
  func.func @transform_7(%arg0: i32) -> (i32, i32) {
    %c0_i32 = arith.constant 0 : i32
    %c0_i32_0 = arith.constant 0 : i32
    return %arg0, %c0_i32 : i32, i32
  }
}

module attributes {stable_mosaic.version = 11 : i64} {
  func.func @_bm_value_kernel(%arg0: i32, %arg1: memref<16x32xbf16, #tpu.memory_space<vmem>>, %arg2: memref<32x64xbf16, #tpu.memory_space<vmem>>, %arg3: memref<1x64xf32, #tpu.memory_space<vmem>>, %arg4: memref<64x32xbf16, #tpu.memory_space<vmem>>, %arg5: memref<1x32xf32, #tpu.memory_space<vmem>>, %arg6: memref<1x32xf32, #tpu.memory_space<vmem>>, %arg7: memref<1x1xf32, #tpu.memory_space<vmem>>, %arg8: memref<16x1xf32, #tpu.memory_space<vmem>>) attributes {dimension_semantics = [#tpu.dimension_semantics<parallel>], iteration_bounds = array<i64: 1>, scalar_prefetch = 0 : i64, scratch_operands = 0 : i64, tpu.core_type = #tpu.core_type<tc>, window_params = [{transform_indices = @transform_0, window_bounds = array<i64: 16, 32>}, {pipeline_mode = #tpu.pipeline_mode<synchronous>, transform_indices = @transform_1, window_bounds = array<i64: 32, 64>}, {pipeline_mode = #tpu.pipeline_mode<synchronous>, transform_indices = @transform_2, window_bounds = array<i64: 1, 64>}, {pipeline_mode = #tpu.pipeline_mode<synchronous>, transform_indices = @transform_3, window_bounds = array<i64: 64, 32>}, {pipeline_mode = #tpu.pipeline_mode<synchronous>, transform_indices = @transform_4, window_bounds = array<i64: 1, 32>}, {pipeline_mode = #tpu.pipeline_mode<synchronous>, transform_indices = @transform_5, window_bounds = array<i64: 1, 32>}, {pipeline_mode = #tpu.pipeline_mode<synchronous>, transform_indices = @transform_6, window_bounds = array<i64: 1, 1>}, {transform_indices = @transform_7, window_bounds = array<i64: 16, 1>}]} {
    %c0 = arith.constant 0 : index
    %c0_0 = arith.constant 0 : index
    %0 = vector.load %arg1[%c0, %c0_0] : memref<16x32xbf16, #tpu.memory_space<vmem>>, vector<16x32xbf16>
    %c0_1 = arith.constant 0 : index
    %c0_2 = arith.constant 0 : index
    %1 = vector.load %arg2[%c0_1, %c0_2] : memref<32x64xbf16, #tpu.memory_space<vmem>>, vector<32x64xbf16>
    %cst = arith.constant dense<0.000000e+00> : vector<16x64xf32>
    %2 = tpu.matmul %0, %1, %cst {dimension_numbers = #tpu.dot_dimension_numbers<[1], [0], [0], [1], [0, 0, 1, 1], [], []>} : vector<16x32xbf16>, vector<32x64xbf16>, vector<16x64xf32> -> vector<16x64xf32>
    %c0_3 = arith.constant 0 : index
    %c0_4 = arith.constant 0 : index
    %3 = vector.load %arg3[%c0_3, %c0_4] : memref<1x64xf32, #tpu.memory_space<vmem>>, vector<1x64xf32>
    %4 = vector.broadcast %3 : vector<1x64xf32> to vector<16x64xf32>
    %5 = arith.addf %2, %4 : vector<16x64xf32>
    %cst_5 = arith.constant 0.000000e+00 : f32
    %6 = vector.broadcast %cst_5 : f32 to vector<16x64xf32>
    %7 = arith.maximumf %5, %6 : vector<16x64xf32>
    %8 = arith.truncf %7 : vector<16x64xf32> to vector<16x64xbf16>
    %c0_6 = arith.constant 0 : index
    %c0_7 = arith.constant 0 : index
    %9 = vector.load %arg4[%c0_6, %c0_7] : memref<64x32xbf16, #tpu.memory_space<vmem>>, vector<64x32xbf16>
    %cst_8 = arith.constant dense<0.000000e+00> : vector<16x32xf32>
    %10 = tpu.matmul %8, %9, %cst_8 {dimension_numbers = #tpu.dot_dimension_numbers<[1], [0], [0], [1], [0, 0, 1, 1], [], []>} : vector<16x64xbf16>, vector<64x32xbf16>, vector<16x32xf32> -> vector<16x32xf32>
    %c0_9 = arith.constant 0 : index
    %c0_10 = arith.constant 0 : index
    %11 = vector.load %arg5[%c0_9, %c0_10] : memref<1x32xf32, #tpu.memory_space<vmem>>, vector<1x32xf32>
    %12 = vector.broadcast %11 : vector<1x32xf32> to vector<16x32xf32>
    %13 = arith.addf %10, %12 : vector<16x32xf32>
    %cst_11 = arith.constant 0.000000e+00 : f32
    %14 = vector.broadcast %cst_11 : f32 to vector<16x32xf32>
    %15 = arith.maximumf %13, %14 : vector<16x32xf32>
    %c0_12 = arith.constant 0 : index
    %c0_13 = arith.constant 0 : index
    %16 = vector.load %arg6[%c0_12, %c0_13] : memref<1x32xf32, #tpu.memory_space<vmem>>, vector<1x32xf32>
    %17 = vector.broadcast %16 : vector<1x32xf32> to vector<16x32xf32>
    %18 = arith.mulf %15, %17 : vector<16x32xf32>
    %cst_14 = arith.constant dense<0.000000e+00> : vector<16xf32>
    %19 = vector.multi_reduction <add>, %18, %cst_14 [1] : vector<16x32xf32> to vector<16xf32>
    %20 = vector.shape_cast %19 : vector<16xf32> to vector<16x1xf32>
    %c0_15 = arith.constant 0 : index
    %c0_16 = arith.constant 0 : index
    %21 = vector.load %arg7[%c0_15, %c0_16] : memref<1x1xf32, #tpu.memory_space<vmem>>, vector<1x1xf32>
    %22 = vector.broadcast %21 : vector<1x1xf32> to vector<16x1xf32>
    %23 = arith.addf %20, %22 : vector<16x1xf32>
    %c0_17 = arith.constant 0 : index
    %c0_18 = arith.constant 0 : index
    %24 = vector.load %arg8[%c0_17, %c0_18] : memref<16x1xf32, #tpu.memory_space<vmem>>, vector<16x1xf32>
    tpu.vector_store %arg8[%c0_17, %c0_18], %23 {strides = array<i32>} : memref<16x1xf32, #tpu.memory_space<vmem>>, vector<16x1xf32>,
    return
  }
  func.func @transform_0(%arg0: i32) -> (i32, i32) {
    %c0_i32 = arith.constant 0 : i32
    %c0_i32_0 = arith.constant 0 : i32
    return %arg0, %c0_i32 : i32, i32
  }
  func.func @transform_1(%arg0: i32) -> (i32, i32) {
    %c0_i32 = arith.constant 0 : i32
    %c0_i32_0 = arith.constant 0 : i32
    %c0_i32_1 = arith.constant 0 : i32
    return %c0_i32, %c0_i32_0 : i32, i32
  }
  func.func @transform_2(%arg0: i32) -> (i32, i32) {
    %c0_i32 = arith.constant 0 : i32
    %c0_i32_0 = arith.constant 0 : i32
    %c0_i32_1 = arith.constant 0 : i32
    return %c0_i32, %c0_i32_0 : i32, i32
  }
  func.func @transform_3(%arg0: i32) -> (i32, i32) {
    %c0_i32 = arith.constant 0 : i32
    %c0_i32_0 = arith.constant 0 : i32
    %c0_i32_1 = arith.constant 0 : i32
    return %c0_i32, %c0_i32_0 : i32, i32
  }
  func.func @transform_4(%arg0: i32) -> (i32, i32) {
    %c0_i32 = arith.constant 0 : i32
    %c0_i32_0 = arith.constant 0 : i32
    %c0_i32_1 = arith.constant 0 : i32
    return %c0_i32, %c0_i32_0 : i32, i32
  }
  func.func @transform_5(%arg0: i32) -> (i32, i32) {
    %c0_i32 = arith.constant 0 : i32
    %c0_i32_0 = arith.constant 0 : i32
    %c0_i32_1 = arith.constant 0 : i32
    return %c0_i32, %c0_i32_0 : i32, i32
  }
  func.func @transform_6(%arg0: i32) -> (i32, i32) {
    %c0_i32 = arith.constant 0 : i32
    %c0_i32_0 = arith.constant 0 : i32
    %c0_i32_1 = arith.constant 0 : i32
    return %c0_i32, %c0_i32_0 : i32, i32
  }
  func.func @transform_7(%arg0: i32) -> (i32, i32) {
    %c0_i32 = arith.constant 0 : i32
    %c0_i32_0 = arith.constant 0 : i32
    return %arg0, %c0_i32 : i32, i32
  }
}

</mosaic_0001>

<bundles_post_ra>
// kernel: tpu_custom_call.1
= control target key start
LH: loop header
LB: loop body
LE: loop exit
PB: predicated region body
PF: predicated region fallthrough
CT: control target
= control target key end

     0   :  { %vm56_vm0 = vcmask 261120   ;;  %vm113_vm1 = vcmask 523264   ;;  %vm151_vm2 = vcmask 7168   ;;  %s281_s1 = inlined_call_operand.vmem [shape: bf16[32,64], index: 1, kind: input, shape index: {}]   ;;  %s282_s2 = inlined_call_operand.vmem [shape: f32[1,64], index: 2, kind: input, shape index: {}]   ;;  %s283_s0 = inlined_call_operand.vmem [shape: bf16[16,32], index: 0, kind: input, shape index: {}]   ;;  %s284_s4 = inlined_call_operand.vmem [shape: f32[1,32], index: 4, kind: input, shape index: {}]   ;;  %s285_s3 = inlined_call_operand.vmem [shape: bf16[64,32], index: 3, kind: input, shape index: {}]   ;;  %s286_s5 = inlined_call_operand.vmem [shape: f32[1,32], index: 5, kind: input, shape index: {}]   ;;  %s287_s6 = inlined_call_operand.<no memory space> [shape: f32[1,1], index: 6, kind: input, shape index: {}]   ;;  %s288_s7 = inlined_call_operand.vmem [shape: f32[16,1], index: 7, kind: output, shape index: {}]  }
   0x1   :  { %v190_v0 = vld [vmem:[%s281_s1 + $0x8] sm:$0xff]  ;;  %v189_v1 = vld [vmem:[%s281_s1] sm:$0xff]  ;;  %v194_v3 = vld [vmem:[%s285_s3 + $0x18] sm:$0xff]  ;;  %v12_v15 = vstv %s287_s6 }
   0x2   :  { %66 = vmatpush.bf16.msra.mxu0 %v190_v0  ;;  %v188_v2 = vld [vmem:[%s283_s0] sm:$0xff]  ;;  %121 = vmatpush.bf16.msra.mxu1 %v194_v3  ;;  %v193_v4 = vld [vmem:[%s285_s3 + $0x10] sm:$0xff]  ;;  %v192_v5 = vld [vmem:[%s285_s3 + $0x8] sm:$0xff]  ;;  %13 = vst [vmem:[#allocation2] sm:$0x1] %v12_v15 }
   0x3   :  { %v191_v6 = vld [vmem:[%s285_s3] sm:$0xff] }
   0x4   :  { %v195_v8 = vld [vmem:[%s282_s2] ss:$0 sm:$0xff] }
   0x5   :  { %v196_v16 = vld [vmem:[%s284_s4] ss:$0 sm:$0xff] }
   0x6   :  { %67 = vmatpush.bf16.msra.mxu0 %v189_v1  ;;  %122 = vmatpush.bf16.msra.mxu1 %v193_v4  ;;  %v197_v19 = vld [vmem:[%s286_s5] ss:$0 sm:$0xff] }
   0x9   :  { %170 = vmatmul.msk.bf16.vlgmr.msra.gmra.mxu0 %vm56_vm0, %v188_v2  ;;  %v198_v28 = vld [vmem:[#allocation2] ss:$0 sm:$0xff] }
   0xa   :  { %123 = vmatpush.bf16.msra.mxu1 %v192_v5 }
   0xe   :  { %124 = vmatpush.bf16.msra.mxu1 %v191_v6 }
  0x86   :  { %v69_v7 = vpop.f32.mrf.mxu0 }
  0x87   :  { %v70_v9 = vadd.f32 %v195_v8, %v69_v7 }
  0x89   :  { %v74_v12 = vmax.f32 %v70_v9, 0.0 }
  0x8e   :  { %v71_v10 = vpop.f32.mrf.mxu0 }
  0x8f   :  { %v72_v11 = vadd.f32 %v195_v8, %v71_v10 }
  0x91   :  { %v75_v13 = vmax.f32 %v72_v11, 0.0 }
  0x93   :  { %v76_v14 = vpack.c.bf16 %v75_v13, %v74_v12 }
  0x95   :  { %187 = vmatmul.msk.bf16.vlgmr.msra.gmra.mxu1 %vm113_vm1, %v76_v14 }
 0x112   :  { %v126_v17 = vpop.f32.mrf.mxu1 }
 0x113   :  { %v127_v18 = vadd.f32 %v196_v16, %v126_v17 }
 0x115   :  { %v131_v20 = vmax.f32 %v127_v18, 0.0 }
 0x117   :  { %v137_v21 = vmul.f32 %v197_v19, %v131_v20 }
 0x119   :  { %v139_v22 = vsel %vm56_vm0, %v137_v21, 0.0 }
 0x11a   :  { %v128_v23 = vpop.f32.mrf.mxu1  ;;  %140 = vadd.xlane.f32.xlu0 %v139_v22 }
 0x11b   :  { %v129_v24 = vadd.f32 %v196_v16, %v128_v23 }
 0x11d   :  { %v132_v25 = vmax.f32 %v129_v24, 0.0 }
 0x11f   :  { %v138_v26 = vmul.f32 %v197_v19, %v132_v25 }
 0x121   :  { %v142_v27 = vsel %vm56_vm0, %v138_v26, 0.0 }
 0x122   :  { %143 = vadd.xlane.f32.xlu0 %v142_v27 }
 0x18d   :  { %v141_v29 = vpop.xlane.xlu0 %140 }
 0x18e   :  { %v149_v30 = vadd.f32 %v198_v28, %v141_v29 }
 0x190   :  { %152 = vst.msk [vmem:[%s288_s7] sm:$0xff] %vm151_vm2, %v149_v30 }
 0x195   :  { %v144_v31 = vpop.xlane.xlu0 %143 }
 0x196   :  { %v150_v32 = vadd.f32 %v198_v28, %v144_v31 }
 0x198   :  { %153 = vst.msk [vmem:[%s288_s7 + $0x8] sm:$0xff] %vm151_vm2, %v150_v32 }

// kernel: tpu_custom_call.1
= control target key start
LH: loop header
LB: loop body
LE: loop exit
PB: predicated region body
PF: predicated region fallthrough
CT: control target
= control target key end

     0   :  { %vm56_vm0 = vcmask 261120   ;;  %vm113_vm1 = vcmask 523264   ;;  %vm151_vm2 = vcmask 7168   ;;  %s281_s1 = inlined_call_operand.vmem [shape: bf16[32,64], index: 1, kind: input, shape index: {}]   ;;  %s282_s2 = inlined_call_operand.vmem [shape: f32[1,64], index: 2, kind: input, shape index: {}]   ;;  %s283_s0 = inlined_call_operand.vmem [shape: bf16[16,32], index: 0, kind: input, shape index: {}]   ;;  %s284_s4 = inlined_call_operand.vmem [shape: f32[1,32], index: 4, kind: input, shape index: {}]   ;;  %s285_s3 = inlined_call_operand.vmem [shape: bf16[64,32], index: 3, kind: input, shape index: {}]   ;;  %s286_s5 = inlined_call_operand.vmem [shape: f32[1,32], index: 5, kind: input, shape index: {}]   ;;  %s287_s6 = inlined_call_operand.<no memory space> [shape: f32[1,1], index: 6, kind: input, shape index: {}]   ;;  %s288_s7 = inlined_call_operand.vmem [shape: f32[16,1], index: 7, kind: output, shape index: {}]  }
   0x1   :  { %v190_v0 = vld [vmem:[%s281_s1 + $0x8] sm:$0xff]  ;;  %v189_v1 = vld [vmem:[%s281_s1] sm:$0xff]  ;;  %v194_v3 = vld [vmem:[%s285_s3 + $0x18] sm:$0xff]  ;;  %v12_v15 = vstv %s287_s6 }
   0x2   :  { %66 = vmatpush.bf16.msra.mxu0 %v190_v0  ;;  %v188_v2 = vld [vmem:[%s283_s0] sm:$0xff]  ;;  %121 = vmatpush.bf16.msra.mxu1 %v194_v3  ;;  %v193_v4 = vld [vmem:[%s285_s3 + $0x10] sm:$0xff]  ;;  %v192_v5 = vld [vmem:[%s285_s3 + $0x8] sm:$0xff]  ;;  %13 = vst [vmem:[#allocation2] sm:$0x1] %v12_v15 }
   0x3   :  { %v191_v6 = vld [vmem:[%s285_s3] sm:$0xff] }
   0x4   :  { %v195_v8 = vld [vmem:[%s282_s2] ss:$0 sm:$0xff] }
   0x5   :  { %v196_v16 = vld [vmem:[%s284_s4] ss:$0 sm:$0xff] }
   0x6   :  { %67 = vmatpush.bf16.msra.mxu0 %v189_v1  ;;  %122 = vmatpush.bf16.msra.mxu1 %v193_v4  ;;  %v197_v19 = vld [vmem:[%s286_s5] ss:$0 sm:$0xff] }
   0x9   :  { %170 = vmatmul.msk.bf16.vlgmr.msra.gmra.mxu0 %vm56_vm0, %v188_v2  ;;  %v198_v28 = vld [vmem:[#allocation2] ss:$0 sm:$0xff] }
   0xa   :  { %123 = vmatpush.bf16.msra.mxu1 %v192_v5 }
   0xe   :  { %124 = vmatpush.bf16.msra.mxu1 %v191_v6 }
  0x86   :  { %v69_v7 = vpop.f32.mrf.mxu0 }
  0x87   :  { %v70_v9 = vadd.f32 %v195_v8, %v69_v7 }
  0x89   :  { %v74_v12 = vmax.f32 %v70_v9, 0.0 }
  0x8e   :  { %v71_v10 = vpop.f32.mrf.mxu0 }
  0x8f   :  { %v72_v11 = vadd.f32 %v195_v8, %v71_v10 }
  0x91   :  { %v75_v13 = vmax.f32 %v72_v11, 0.0 }
  0x93   :  { %v76_v14 = vpack.c.bf16 %v75_v13, %v74_v12 }
  0x95   :  { %187 = vmatmul.msk.bf16.vlgmr.msra.gmra.mxu1 %vm113_vm1, %v76_v14 }
 0x112   :  { %v126_v17 = vpop.f32.mrf.mxu1 }
 0x113   :  { %v127_v18 = vadd.f32 %v196_v16, %v126_v17 }
 0x115   :  { %v131_v20 = vmax.f32 %v127_v18, 0.0 }
 0x117   :  { %v137_v21 = vmul.f32 %v197_v19, %v131_v20 }
 0x119   :  { %v139_v22 = vsel %vm56_vm0, %v137_v21, 0.0 }
 0x11a   :  { %v128_v23 = vpop.f32.mrf.mxu1  ;;  %140 = vadd.xlane.f32.xlu0 %v139_v22 }
 0x11b   :  { %v129_v24 = vadd.f32 %v196_v16, %v128_v23 }
 0x11d   :  { %v132_v25 = vmax.f32 %v129_v24, 0.0 }
 0x11f   :  { %v138_v26 = vmul.f32 %v197_v19, %v132_v25 }
 0x121   :  { %v142_v27 = vsel %vm56_vm0, %v138_v26, 0.0 }
 0x122   :  { %143 = vadd.xlane.f32.xlu0 %v142_v27 }
 0x18d   :  { %v141_v29 = vpop.xlane.xlu0 %140 }
 0x18e   :  { %v149_v30 = vadd.f32 %v198_v28, %v141_v29 }
 0x190   :  { %152 = vst.msk [vmem:[%s288_s7] sm:$0xff] %vm151_vm2, %v149_v30 }
 0x195   :  { %v144_v31 = vpop.xlane.xlu0 %143 }
 0x196   :  { %v150_v32 = vadd.f32 %v198_v28, %v144_v31 }
 0x198   :  { %153 = vst.msk [vmem:[%s288_s7 + $0x8] sm:$0xff] %vm151_vm2, %v150_v32 }

</bundles_post_ra>
